<compile_context>
chip_gen: v5e
topology: v5e:2x2
jax: 0.10.0
libtpu: 0.0.40
codegen_flags: <defaults>
</compile_context>

<pallas_src>
import functools

import jax
import jax.numpy as jnp
from jax.experimental import pallas as pl
from jax.experimental.pallas import tpu as pltpu


def _temporal_block_kernel(
    x_ref,      # (1, Cin, TL)      bf16  input tile, global times [t0, t0+TL)
    halo_ref,   # (1, 1, Cin, 2P)   bf16  causal halo, times [t0-2P, t0) (zeros where t < 0)
    w1_ref,     # (H, K*Cin)        bf16  tap-stacked conv1 weight
    b1_ref,     # (H, 1)            f32
    w2_ref,     # (H, K*H)          bf16  tap-stacked conv2 weight
    b2_ref,     # (H, 1)            f32
    *rest,      # [wd_ref (H, Cin) bf16, bd_ref (H, 1) f32,]  o_ref (1, H, TL)
    kernel_size: int,
    dilation: int,
    padding: int,
    block_l: int,
    has_downsample: bool,
):
    if has_downsample:
        wd_ref, bd_ref, o_ref = rest
    else:
        (o_ref,) = rest

    K, d, P, TL = kernel_size, dilation, padding, block_l
    W1 = TL + P                    # conv1 is evaluated on TL + P positions (P-row halo for conv2)
    two_p = 2 * P
    t0 = pl.program_id(1) * TL     # global time of this tile's first output column

    x = x_ref[0]                   # (Cin, TL)  bf16
    halo = halo_ref[0, 0]          # (Cin, 2P)  bf16

    # ---- conv1 (dilated causal) as ONE tap-stacked matmul -----------------------------
    # h1[:, s] is conv1's output at global time t0 - P + s.
    # Tap k needs the window covering global times [t0 - 2P + k*d, t0 - 2P + k*d + W1):
    # its first (2P - k*d) columns come from the halo, the rest from the x tile.
    taps = []
    for k in range(K):
        hw = two_p - k * d
        taps.append(jnp.concatenate([halo[:, k * d:], x[:, : W1 - hw]], axis=-1))
    stack1 = taps[0] if K == 1 else jnp.concatenate(taps, axis=0)       # (K*Cin, W1)
    acc1 = jnp.dot(w1_ref[...], stack1, preferred_element_type=jnp.float32)
    h1 = jnp.maximum(acc1 + b1_ref[...], 0.0)
    # TODO(synk): dropout1/dropout2 use eval-mode identity semantics (no random masking).

    # Positions with global time < 0 correspond to conv2's zero padding, NOT relu(bias):
    # force them to zero.  Cheap 1-row lane iota + broadcast select (only the first tile
    # actually has negative times; for all other tiles this is an all-true select).
    pos = (t0 - P) + jax.lax.broadcasted_iota(jnp.int32, (1, W1), 1)
    h1 = jnp.where(pos >= 0, h1, 0.0).astype(x.dtype)                   # bf16 for 2nd MXU pass

    # ---- conv2 (dilated causal) as ONE tap-stacked matmul -----------------------------
    taps2 = [h1[:, k * d : k * d + TL] for k in range(K)]
    stack2 = taps2[0] if K == 1 else jnp.concatenate(taps2, axis=0)     # (K*H, TL)
    acc2 = jnp.dot(w2_ref[...], stack2, preferred_element_type=jnp.float32)
    out = jnp.maximum(acc2 + b2_ref[...], 0.0)

    # ---- residual branch + final ReLU --------------------------------------------------
    if has_downsample:
        res = jnp.dot(wd_ref[...], x, preferred_element_type=jnp.float32) + bd_ref[...]
    else:
        res = x.astype(jnp.float32)
    o_ref[0] = jnp.maximum(out + res, 0.0).astype(o_ref.dtype)


def _vmem_footprint_bytes(Cin, H, K, P, block_l, out_itemsize):
    """Conservative per-grid-step VMEM footprint estimate (pipeline buffers + temporaries)."""
    bf, f32 = 2, 4
    TL = block_l
    W1 = TL + P
    pipe = 2 * (Cin * TL * bf + Cin * 2 * P * bf + H * TL * out_itemsize)   # double-buffered tiles
    wgt = 2 * (H * K * Cin * bf + H * K * H * bf + H * Cin * bf + 3 * H * f32)
    tmp = (K * Cin * W1 * bf            # stack1
           + H * W1 * (f32 + bf)        # acc1/h1 (f32) + masked bf16 copy
           + K * H * TL * bf            # stack2
           + 3 * H * TL * f32)          # acc2, residual, final sum
    return pipe + wgt + tmp


def _pick_block_l(L, B, two_p, footprint_fn, budget):
    """Largest time tile (lane dim) that fits the VMEM budget; keep >=2 grid steps (v7x)."""
    cands = sorted({c for c in (4096, 2048, 1024, 512, 256, 128) if c < L and L % c == 0} | {L},
                   reverse=True)
    fitting = [c for c in cands if footprint_fn(c) <= budget] or [cands[-1]]
    # Prefer tiles at least as wide as the causal halo (2P) so the duplicated halo read
    # stays a small fraction of the tile.
    preferred = [c for c in fitting if c >= two_p] or fitting
    block_l = preferred[0]
    # v7x has 2 TensorCores sharded over the parallel grid axes: keep B*NT >= 2 if possible.
    if B * (L // block_l) < 2:
        smaller = [c for c in fitting if c < block_l]
        if smaller:
            block_l = smaller[0]
    return block_l


def temporal_block_forward(x_ncl, params, *, kernel_size, dilation, padding,
                           block_l=None, out_dtype=jnp.float32):
    """TemporalBlock forward. x_ncl: (B, Cin, L). Returns (B, H, L) in `out_dtype` (NCW)."""
    B, Cin, L = x_ncl.shape
    H = params["w1"].shape[0]
    K = kernel_size
    P = padding
    assert padding == dilation * (kernel_size - 1) and padding > 0, \
        "causal TCN case only: padding == dilation * (kernel_size - 1) > 0"
    two_p = 2 * P
    has_downsample = Cin != H
    out_itemsize = jnp.dtype(out_dtype).itemsize

    # --- per-generation VMEM budget + time-tile selection --------------------------------
    try:
        info = pltpu.get_tpu_info()
        vmem_cap = int(getattr(info, "vmem_capacity_bytes", 0)) or (64 << 20)
    except Exception:
        vmem_cap = 64 << 20                       # conservative default (v7x per-TC VMEM)
    vmem_limit = min(vmem_cap // 2, 64 << 20)     # 32 MiB on v7x, 64 MiB on v5e/v6e
    tile_budget = int(vmem_limit * 0.75)          # headroom for Mosaic internal scratch

    footprint = lambda tl: _vmem_footprint_bytes(Cin, H, K, P, tl, out_itemsize)
    if block_l is None:
        block_l = _pick_block_l(L, B, two_p, footprint, tile_budget)
    assert L % block_l == 0, "L must be a multiple of block_l"
    assert block_l % 128 == 0 or block_l == L, "block_l must be a multiple of 128 (or == L)"
    NT = L // block_l

    # --- bf16 MXU operands, f32 accumulation / bias; tap-stacked weights -----------------
    cdt = jnp.bfloat16
    x_b = x_ncl.astype(cdt)
    # (H, Cin, K) -> (H, K, Cin) -> (H, K*Cin): column k*Cin + c  <->  w[o, c, k]
    w1 = jnp.transpose(params["w1"], (0, 2, 1)).reshape(H, K * Cin).astype(cdt)
    w2 = jnp.transpose(params["w2"], (0, 2, 1)).reshape(H, K * H).astype(cdt)
    b1 = params["b1"].reshape(H, 1).astype(jnp.float32)
    b2 = params["b2"].reshape(H, 1).astype(jnp.float32)

    # Per-tile causal halo (B, NT, Cin, 2P): the 2P input columns preceding each tile,
    # zero where the time index would be negative.  This small slab (B*NT*Cin*2P elems,
    # << x since 2P << block_l) keeps every grid step independent and fully auto-pipelined.
    halos = []
    for t in range(NT):
        start = t * block_l - two_p
        n_zero = max(0, -start)
        pieces = []
        if n_zero > 0:
            pieces.append(jnp.zeros((B, Cin, n_zero), cdt))
        if n_zero < two_p:
            s0 = max(start, 0)
            pieces.append(x_b[:, :, s0 : s0 + (two_p - n_zero)])
        halos.append(pieces[0] if len(pieces) == 1 else jnp.concatenate(pieces, axis=-1))
    halo = jnp.stack(halos, axis=1)                               # (B, NT, Cin, 2P)

    in_specs = [
        pl.BlockSpec((1, Cin, block_l), lambda b, t: (b, 0, t)),
        pl.BlockSpec((1, 1, Cin, two_p), lambda b, t: (b, t, 0, 0)),
        pl.BlockSpec((H, K * Cin), lambda b, t: (0, 0)),
        pl.BlockSpec((H, 1), lambda b, t: (0, 0)),
        pl.BlockSpec((H, K * H), lambda b, t: (0, 0)),
        pl.BlockSpec((H, 1), lambda b, t: (0, 0)),
    ]
    args = [x_b, halo, w1, b1, w2, b2]
    if has_downsample:
        wd = params["wd"][:, :, 0].astype(cdt)                    # (H, Cin)  (1x1 conv)
        bd = params["bd"].reshape(H, 1).astype(jnp.float32)
        in_specs += [pl.BlockSpec((H, Cin), lambda b, t: (0, 0)),
                     pl.BlockSpec((H, 1), lambda b, t: (0, 0))]
        args += [wd, bd]

    kernel = functools.partial(
        _temporal_block_kernel,
        kernel_size=K, dilation=dilation, padding=P,
        block_l=block_l, has_downsample=has_downsample,
    )

    flops = 2 * B * L * K * H * (Cin + H) + (2 * B * L * Cin * H if has_downsample else 0)
    bytes_accessed = (2 * (x_b.size + halo.size + w1.size + w2.size)
                      + 4 * (b1.size + b2.size) + out_itemsize * B * H * L)
    if has_downsample:
        bytes_accessed += 2 * wd.size + 4 * bd.size

    return pl.pallas_call(
        kernel,
        out_shape=jax.ShapeDtypeStruct((B, H, L), out_dtype),
        grid=(B, NT),
        in_specs=in_specs,
        out_specs=pl.BlockSpec((1, H, block_l), lambda b, t: (b, 0, t)),
        compiler_params=pltpu.CompilerParams(
            dimension_semantics=("parallel", "parallel"),  # halo makes L-tiles independent
            vmem_limit_bytes=int(vmem_limit),              # per-generation cap
        ),
        cost_estimate=pl.CostEstimate(flops=int(flops), transcendentals=0,
                                      bytes_accessed=int(bytes_accessed)),
    )(*args)


# ------------------------- pure-JAX reference (for checking) -------------------------
def _conv1d_ref(x_ncl, w_oik, b, dilation, padding):
    y = jax.lax.conv_general_dilated(
        x_ncl, w_oik,
        window_strides=(1,),
        padding=[(padding, padding)],
        rhs_dilation=(dilation,),
        dimension_numbers=("NCH", "OIH", "NCH"),
        precision=jax.lax.Precision.HIGHEST,
    )
    return y + b[None, :, None]


def temporal_block_reference(x_ncl, params, *, kernel_size, dilation, padding):
    h = _conv1d_ref(x_ncl, params["w1"], params["b1"], dilation, padding)
    h = h[:, :, :-padding] if padding > 0 else h           # Chomp1d
    h = jnp.maximum(h, 0.0)                                 # ReLU (+ dropout identity)
    h = _conv1d_ref(h, params["w2"], params["b2"], dilation, padding)
    h = h[:, :, :-padding] if padding > 0 else h
    h = jnp.maximum(h, 0.0)
    Cin, H = x_ncl.shape[1], params["w1"].shape[0]
    if Cin != H:
        res = _conv1d_ref(x_ncl, params["wd"], params["bd"], 1, 0)
    else:
        res = x_ncl
    return jnp.maximum(h + res, 0.0)


if __name__ == "__main__":
    key = jax.random.PRNGKey(0)

    def run_case(B, Cin, H, L, K, dilation, block_l, out_dtype, tol, case_key):
        padding = (K - 1) * dilation
        ks = jax.random.split(case_key, 7)
        x = jax.random.normal(ks[0], (B, Cin, L), dtype=jnp.float32)
        params = {
            "w1": 0.2 * jax.random.normal(ks[1], (H, Cin, K), dtype=jnp.float32),
            "b1": 0.1 * jax.random.normal(ks[2], (H,), dtype=jnp.float32),
            "w2": 0.2 * jax.random.normal(ks[3], (H, H, K), dtype=jnp.float32),
            "b2": 0.1 * jax.random.normal(ks[4], (H,), dtype=jnp.float32),
        }
        if Cin != H:
            params["wd"] = 0.2 * jax.random.normal(ks[5], (H, Cin, 1), dtype=jnp.float32)
            params["bd"] = 0.1 * jax.random.normal(ks[6], (H,), dtype=jnp.float32)

        out = temporal_block_forward(x, params, kernel_size=K, dilation=dilation,
                                     padding=padding, block_l=block_l, out_dtype=out_dtype)
        out = jax.block_until_ready(out)
        assert out.shape == (B, H, L), out.shape
        assert out.dtype == out_dtype, out.dtype

        # Reference on bf16-rounded x / weights (the kernel carries bf16 MXU operands).
        q = lambda a: a.astype(jnp.bfloat16).astype(jnp.float32)
        params_q = {k: (q(v) if k.startswith("w") else v) for k, v in params.items()}
        ref = temporal_block_reference(q(x), params_q, kernel_size=K,
                                       dilation=dilation, padding=padding)
        out_f32 = out.astype(jnp.float32)
        err = float(jnp.max(jnp.abs(out_f32 - ref)))
        assert jnp.allclose(out_f32, ref, atol=tol, rtol=tol), err

    k1, k2 = jax.random.split(key)
    # Downsample path (Cin != H), two L-tiles of 128: exercises halo + causal-mask logic.
    run_case(B=2, Cin=4, H=8, L=256, K=3, dilation=2, block_l=128,
             out_dtype=jnp.float32, tol=3e-2, case_key=k1)
    # Identity-residual path (Cin == H), auto block_l selection, bf16 output path.
    run_case(B=2, Cin=8, H=8, L=128, K=2, dilation=1, block_l=None,
             out_dtype=jnp.bfloat16, tol=6e-2, case_key=k2)

    print("KERNEL_OK")
</pallas_src>

<mosaic_0001>
module attributes {stable_mosaic.version = 11 : i64} {
  func.func @_temporal_block_kernel(%arg0: i32, %arg1: i32, %arg2: memref<1x4x128xbf16, #tpu.memory_space<vmem>>, %arg3: memref<1x1x4x8xbf16, #tpu.memory_space<vmem>>, %arg4: memref<8x12xbf16, #tpu.memory_space<vmem>>, %arg5: memref<8x1xf32, #tpu.memory_space<vmem>>, %arg6: memref<8x24xbf16, #tpu.memory_space<vmem>>, %arg7: memref<8x1xf32, #tpu.memory_space<vmem>>, %arg8: memref<8x4xbf16, #tpu.memory_space<vmem>>, %arg9: memref<8x1xf32, #tpu.memory_space<vmem>>, %arg10: memref<1x8x128xf32, #tpu.memory_space<vmem>>) attributes {dimension_semantics = [#tpu.dimension_semantics<parallel>, #tpu.dimension_semantics<parallel>], iteration_bounds = array<i64: 2, 2>, scalar_prefetch = 0 : i64, scratch_operands = 0 : i64, tpu.core_type = #tpu.core_type<tc>, window_params = [{transform_indices = @transform_0, window_bounds = array<i64: 1, 4, 128>}, {transform_indices = @transform_1, window_bounds = array<i64: 1, 1, 4, 8>}, {pipeline_mode = #tpu.pipeline_mode<synchronous>, transform_indices = @transform_2, window_bounds = array<i64: 8, 12>}, {pipeline_mode = #tpu.pipeline_mode<synchronous>, transform_indices = @transform_3, window_bounds = array<i64: 8, 1>}, {pipeline_mode = #tpu.pipeline_mode<synchronous>, transform_indices = @transform_4, window_bounds = array<i64: 8, 24>}, {pipeline_mode = #tpu.pipeline_mode<synchronous>, transform_indices = @transform_5, window_bounds = array<i64: 8, 1>}, {pipeline_mode = #tpu.pipeline_mode<synchronous>, transform_indices = @transform_6, window_bounds = array<i64: 8, 4>}, {pipeline_mode = #tpu.pipeline_mode<synchronous>, transform_indices = @transform_7, window_bounds = array<i64: 8, 1>}, {transform_indices = @transform_8, window_bounds = array<i64: 1, 8, 128>}]} {
    %c128_i32 = arith.constant 128 : i32
    %0 = arith.muli %arg1, %c128_i32 : i32
    %c0 = arith.constant 0 : index
    %c0_0 = arith.constant 0 : index
    %c0_1 = arith.constant 0 : index
    %1 = vector.load %arg2[%c0, %c0_0, %c0_1] : memref<1x4x128xbf16, #tpu.memory_space<vmem>>, vector<1x4x128xbf16>
    %2 = vector.shape_cast %1 : vector<1x4x128xbf16> to vector<4x128xbf16>
    %c0_2 = arith.constant 0 : index
    %c0_3 = arith.constant 0 : index
    %c0_4 = arith.constant 0 : index
    %c0_5 = arith.constant 0 : index
    %3 = vector.load %arg3[%c0_2, %c0_3, %c0_4, %c0_5] : memref<1x1x4x8xbf16, #tpu.memory_space<vmem>>, vector<1x1x4x8xbf16>
    %4 = vector.shape_cast %3 : vector<1x1x4x8xbf16> to vector<4x8xbf16>
    %5 = vector.extract_strided_slice %2 {offsets = [0, 0], sizes = [4, 124], strides = [1, 1]} : vector<4x128xbf16> to vector<4x124xbf16>
    %6 = tpu.concatenate %4, %5 in 1 : vector<4x8xbf16>, vector<4x124xbf16> -> vector<4x132xbf16>
    %7 = vector.extract_strided_slice %4 {offsets = [0, 2], sizes = [4, 6], strides = [1, 1]} : vector<4x8xbf16> to vector<4x6xbf16>
    %8 = vector.extract_strided_slice %2 {offsets = [0, 0], sizes = [4, 126], strides = [1, 1]} : vector<4x128xbf16> to vector<4x126xbf16>
    %9 = tpu.concatenate %7, %8 in 1 : vector<4x6xbf16>, vector<4x126xbf16> -> vector<4x132xbf16>
    %10 = vector.extract_strided_slice %4 {offsets = [0, 4], sizes = [4, 4], strides = [1, 1]} : vector<4x8xbf16> to vector<4x4xbf16>
    %11 = tpu.concatenate %10, %2 in 1 : vector<4x4xbf16>, vector<4x128xbf16> -> vector<4x132xbf16>
    %12 = tpu.concatenate %6, %9, %11 in 0 : vector<4x132xbf16>, vector<4x132xbf16>, vector<4x132xbf16> -> vector<12x132xbf16>
    %c0_6 = arith.constant 0 : index
    %c0_7 = arith.constant 0 : index
    %13 = vector.load %arg4[%c0_6, %c0_7] : memref<8x12xbf16, #tpu.memory_space<vmem>>, vector<8x12xbf16>
    %cst = arith.constant dense<0.000000e+00> : vector<8x132xf32>
    %14 = tpu.matmul %13, %12, %cst {dimension_numbers = #tpu.dot_dimension_numbers<[1], [0], [0], [1], [0, 0, 1, 1], [], []>} : vector<8x12xbf16>, vector<12x132xbf16>, vector<8x132xf32> -> vector<8x132xf32>
    %c0_8 = arith.constant 0 : index
    %c0_9 = arith.constant 0 : index
    %15 = vector.load %arg5[%c0_8, %c0_9] : memref<8x1xf32, #tpu.memory_space<vmem>>, vector<8x1xf32>
    %16 = vector.broadcast %15 : vector<8x1xf32> to vector<8x132xf32>
    %17 = arith.addf %14, %16 : vector<8x132xf32>
    %cst_10 = arith.constant 0.000000e+00 : f32
    %18 = vector.broadcast %cst_10 : f32 to vector<8x132xf32>
    %19 = arith.maximumf %17, %18 : vector<8x132xf32>
    %c4_i32 = arith.constant 4 : i32
    %20 = arith.subi %0, %c4_i32 : i32
    %21 = tpu.iota {dimensions = array<i32: 1>} : vector<1x132xi32>
    %22 = vector.broadcast %20 : i32 to vector<1x132xi32>
    %23 = arith.addi %22, %21 : vector<1x132xi32>
    %c0_i32 = arith.constant 0 : i32
    %24 = vector.broadcast %c0_i32 : i32 to vector<1x132xi32>
    %25 = arith.cmpi sge, %23, %24 : vector<1x132xi32>
    %cst_11 = arith.constant 0.000000e+00 : f32
    %26 = vector.shape_cast %25 : vector<1x132xi1> to vector<1x132xi1>
    %27 = vector.broadcast %26 : vector<1x132xi1> to vector<8x132xi1>
    %28 = vector.broadcast %cst_11 : f32 to vector<8x132xf32>
    %29 = arith.select %27, %19, %28 : vector<8x132xi1>, vector<8x132xf32>
    %30 = arith.truncf %29 : vector<8x132xf32> to vector<8x132xbf16>
    %31 = vector.extract_strided_slice %30 {offsets = [0, 0], sizes = [8, 128], strides = [1, 1]} : vector<8x132xbf16> to vector<8x128xbf16>
    %32 = vector.extract_strided_slice %30 {offsets = [0, 2], sizes = [8, 128], strides = [1, 1]} : vector<8x132xbf16> to vector<8x128xbf16>
    %33 = vector.extract_strided_slice %30 {offsets = [0, 4], sizes = [8, 128], strides = [1, 1]} : vector<8x132xbf16> to vector<8x128xbf16>
    %34 = tpu.concatenate %31, %32, %33 in 0 : vector<8x128xbf16>, vector<8x128xbf16>, vector<8x128xbf16> -> vector<24x128xbf16>
    %c0_12 = arith.constant 0 : index
    %c0_13 = arith.constant 0 : index
    %35 = vector.load %arg6[%c0_12, %c0_13] : memref<8x24xbf16, #tpu.memory_space<vmem>>, vector<8x24xbf16>
    %cst_14 = arith.constant dense<0.000000e+00> : vector<8x128xf32>
    %36 = tpu.matmul %35, %34, %cst_14 {dimension_numbers = #tpu.dot_dimension_numbers<[1], [0], [0], [1], [0, 0, 1, 1], [], []>} : vector<8x24xbf16>, vector<24x128xbf16>, vector<8x128xf32> -> vector<8x128xf32>
    %c0_15 = arith.constant 0 : index
    %c0_16 = arith.constant 0 : index
    %37 = vector.load %arg7[%c0_15, %c0_16] : memref<8x1xf32, #tpu.memory_space<vmem>>, vector<8x1xf32>
    %38 = vector.broadcast %37 : vector<8x1xf32> to vector<8x128xf32>
    %39 = arith.addf %36, %38 : vector<8x128xf32>
    %cst_17 = arith.constant 0.000000e+00 : f32
    %40 = vector.broadcast %cst_17 : f32 to vector<8x128xf32>
    %41 = arith.maximumf %39, %40 : vector<8x128xf32>
    %c0_18 = arith.constant 0 : index
    %c0_19 = arith.constant 0 : index
    %42 = vector.load %arg8[%c0_18, %c0_19] : memref<8x4xbf16, #tpu.memory_space<vmem>>, vector<8x4xbf16>
    %cst_20 = arith.constant dense<0.000000e+00> : vector<8x128xf32>
    %43 = tpu.matmul %42, %2, %cst_20 {dimension_numbers = #tpu.dot_dimension_numbers<[1], [0], [0], [1], [0, 0, 1, 1], [], []>} : vector<8x4xbf16>, vector<4x128xbf16>, vector<8x128xf32> -> vector<8x128xf32>
    %c0_21 = arith.constant 0 : index
    %c0_22 = arith.constant 0 : index
    %44 = vector.load %arg9[%c0_21, %c0_22] : memref<8x1xf32, #tpu.memory_space<vmem>>, vector<8x1xf32>
    %45 = vector.broadcast %44 : vector<8x1xf32> to vector<8x128xf32>
    %46 = arith.addf %43, %45 : vector<8x128xf32>
    %47 = arith.addf %41, %46 : vector<8x128xf32>
    %cst_23 = arith.constant 0.000000e+00 : f32
    %48 = vector.broadcast %cst_23 : f32 to vector<8x128xf32>
    %49 = arith.maximumf %47, %48 : vector<8x128xf32>
    %c0_24 = arith.constant 0 : index
    %c0_25 = arith.constant 0 : index
    %c0_26 = arith.constant 0 : index
    %50 = vector.load %arg10[%c0_24, %c0_25, %c0_26] : memref<1x8x128xf32, #tpu.memory_space<vmem>>, vector<1x8x128xf32>
    %51 = vector.shape_cast %50 : vector<1x8x128xf32> to vector<8x128xf32>
    %52 = vector.shape_cast %49 : vector<8x128xf32> to vector<1x8x128xf32>
    tpu.vector_store %arg10[%c0_24, %c0_25, %c0_26], %52 {strides = array<i32>} : memref<1x8x128xf32, #tpu.memory_space<vmem>>, vector<1x8x128xf32>,
    return
  }
  func.func @transform_0(%arg0: i32, %arg1: i32) -> (i32, i32, i32) {
    %c0_i32 = arith.constant 0 : i32
    %c0_i32_0 = arith.constant 0 : i32
    return %arg0, %c0_i32, %arg1 : i32, i32, i32
  }
  func.func @transform_1(%arg0: i32, %arg1: i32) -> (i32, i32, i32, i32) {
    %c0_i32 = arith.constant 0 : i32
    %c0_i32_0 = arith.constant 0 : i32
    %c0_i32_1 = arith.constant 0 : i32
    return %arg0, %arg1, %c0_i32, %c0_i32_0 : i32, i32, i32, i32
  }
  func.func @transform_2(%arg0: i32, %arg1: i32) -> (i32, i32) {
    %c0_i32 = arith.constant 0 : i32
    %c0_i32_0 = arith.constant 0 : i32
    %c0_i32_1 = arith.constant 0 : i32
    return %c0_i32, %c0_i32_0 : i32, i32
  }
  func.func @transform_3(%arg0: i32, %arg1: i32) -> (i32, i32) {
    %c0_i32 = arith.constant 0 : i32
    %c0_i32_0 = arith.constant 0 : i32
    %c0_i32_1 = arith.constant 0 : i32
    return %c0_i32, %c0_i32_0 : i32, i32
  }
  func.func @transform_4(%arg0: i32, %arg1: i32) -> (i32, i32) {
    %c0_i32 = arith.constant 0 : i32
    %c0_i32_0 = arith.constant 0 : i32
    %c0_i32_1 = arith.constant 0 : i32
    return %c0_i32, %c0_i32_0 : i32, i32
  }
  func.func @transform_5(%arg0: i32, %arg1: i32) -> (i32, i32) {
    %c0_i32 = arith.constant 0 : i32
    %c0_i32_0 = arith.constant 0 : i32
    %c0_i32_1 = arith.constant 0 : i32
    return %c0_i32, %c0_i32_0 : i32, i32
  }
  func.func @transform_6(%arg0: i32, %arg1: i32) -> (i32, i32) {
    %c0_i32 = arith.constant 0 : i32
    %c0_i32_0 = arith.constant 0 : i32
    %c0_i32_1 = arith.constant 0 : i32
    return %c0_i32, %c0_i32_0 : i32, i32
  }
  func.func @transform_7(%arg0: i32, %arg1: i32) -> (i32, i32) {
    %c0_i32 = arith.constant 0 : i32
    %c0_i32_0 = arith.constant 0 : i32
    %c0_i32_1 = arith.constant 0 : i32
    return %c0_i32, %c0_i32_0 : i32, i32
  }
  func.func @transform_8(%arg0: i32, %arg1: i32) -> (i32, i32, i32) {
    %c0_i32 = arith.constant 0 : i32
    %c0_i32_0 = arith.constant 0 : i32
    return %arg0, %c0_i32, %arg1 : i32, i32, i32
  }
}

</mosaic_0001>

<bundles_post_ra>
// kernel: tpu_custom_call.1
= control target key start
LH: loop header
LB: loop body
LE: loop exit
PB: predicated region body
PF: predicated region fallthrough
CT: control target
= control target key end

     0   :  { %13 = vsyncpa [#allocation3], 0  ;;  %s1076_s0 = inlined_call_operand.vmem [shape: bf16[2,4,256], index: 0, kind: input, shape index: {}]   ;;  %s1077_s1 = inlined_call_operand.vmem [shape: bf16[2,2,4,8], index: 1, kind: input, shape index: {}]   ;;  %s1078_s2 = inlined_call_operand.vmem [shape: bf16[8,12], index: 2, kind: input, shape index: {}]   ;;  %s1079_s3 = inlined_call_operand.vmem [shape: f32[8,1], index: 3, kind: input, shape index: {}]   ;;  %s1080_s4 = inlined_call_operand.vmem [shape: bf16[8,24], index: 4, kind: input, shape index: {}]   ;;  %s1081_s5 = inlined_call_operand.vmem [shape: f32[8,1], index: 5, kind: input, shape index: {}]   ;;  %s1082_s6 = inlined_call_operand.vmem [shape: bf16[8,4], index: 6, kind: input, shape index: {}]   ;;  %s1083_s7 = inlined_call_operand.vmem [shape: f32[8,1], index: 7, kind: input, shape index: {}]   ;;  %s1084_s8 = inlined_call_operand.hbm [shape: f32[2,8,256], index: 8, kind: output, shape index: {}]  }
   0x1   :  { %15 = vsyncpa [#allocation3 + $0x1], 0  ;;  %s917_s27 = smov 0   ;;  %s919_s28 = smov 0  }
   0x2   :  { %s921_s29 = smov 0   ;;  %s923_s30 = smov 0  }
   0x3   :  { %s925_s9 = smov 0   ;;  %s927_s10 = smov 0  }
   0x4   :  { %s929_s11 = smov 0   ;;  %s931_s12 = smov 0  }
   0x5 LB: > { %1089 = sst [smem:[#allocation5_spill]] %s856_s10  ;;  %s669_s13 = sadd.s32 4294967295, %s864_s12   ;;  %s864_s12 = sphi %s931_s12, %s21_s12   ;;  %s860_s11 = sphi %s929_s11, %s1098_s11   ;;  %s856_s10 = sphi %s927_s10, %s1097_s10   ;;  %s852_s9 = sphi %s925_s9, %s1096_s9   ;;  %s848_s30 = sphi %s923_s30, %s1095_s30   ;;  %s844_s29 = sphi %s921_s29, %s1101_s29   ;;  %s840_s28 = sphi %s919_s28, %s1100_s28   ;;  %s836_s27 = sphi %s917_s27, %s1099_s27  }
   0x6   : > { %1090 = sst [smem:[#allocation6_spill]] %s860_s11  ;;  %s670_s14 = sadd.s32 4294967294, %s864_s12  }
   0x7   : > { %s30_s15 = sadd.s32 1, %s856_s10  ;;  %s33_s16 = sadd.s32 1, %s860_s11 }
   0x8   : > { %p31_p0 = scmp.ge.s32.totalorder %s30_s15, 2  ;;  %p234_p1 = scmp.ne.s32.totalorder %s844_s29, %s840_s28 }
   0x9   : > { %p235_p2 = scmp.eq.s32.totalorder %s669_s13, 3  ;;  %p240_p5 = scmp.ne.s32.totalorder %s840_s28, %s836_s27 }
   0xa   : > { %s1103_s15 = smov (%p31_p0, %s30_s15), 0  ;;  %s1105_s16 = smov (!%p31_p0, %s33_s16), %s860_s11 }
   0xb   : > { %1091 = sst [smem:[#allocation7_spill]] %s1103_s15  ;;  %s220_s17 = ssub.s32 %s856_s10, %s1103_s15 }
   0xc   : > { %p968_p3 = por %p235_p2, %p234_p1  ;;  %p35_p4 = scmp.ge.s32.totalorder %s1105_s16, 2 }
   0xd   : > { %p241_p6 = scmp.eq.s32.totalorder %s670_s14, 3  ;;  %p673_p7 = scmp.ge.s32.totalorder %s864_s12, 1 }
   0xe   : > { %s1107_s16 = smov (%p35_p4, %s1105_s16), 0  ;;  %p299_p9 = scmp.lt.s32.totalorder %s864_s12, 5 }
   0xf   : > { %1093 = sst [smem:[#allocation8_spill]] %s1107_s16  ;;  %p977_p8 = por %p241_p6, %p240_p5 }
  0x10   : > { %s219_s20 = ssub.s32 %s860_s11, %s1107_s16  ;;  %s224_s21 = sadd.s32 1, %s844_s29 }
  0x11   : > { %s221_s22 = sor.u32 %s220_s17, %s219_s20  ;;  %p300_p10 = pnand %p673_p7, %p299_p9 }
  0x12   : > { %p222_p11 = scmp.eq.s32.totalorder %s221_s22, 0  ;;  %p344_p12 = scmp.lt.s32.totalorder (!%p300_p10), %s852_s9, 1 }
  0x13   : > { %303 = sbr.rel (%p300_p10) target bundleno = 603 (0x25b), region = 52  ;;  %p346_p13 = scmp.lt.s32.totalorder (!%p300_p10), %s848_s30, 1 }
  0x14   : > { %s986_s23 = scalar_select %p222_p11, %s844_s29, %s224_s21  }
  0x15   : > { %s866_s11 = smov (!%p300_p10), 8   ;;  %s867_s10 = smov (!%p300_p10), 126  }
  0x16   : > { %s869_s15 = smov (!%p300_p10), 124   ;;  %s870_s16 = smov (!%p300_p10), 4  }
  0x17   : > { %s679_s20 = sshll.u32 (!%p300_p10), %s848_s30, 7 }
  0x18   : > { %s345_s24 = scalar_select %p344_p12, %s852_s9, 1  ;;  %vm408_vm0 = vcmask 1041408   ;;  %v419_v7 = vld [vmem:[%s1079_s3] sm:$0xff]  ;;  %v871_v9 = vmov 0   ;;  %vm398_vm1 = vcmask 31744   ;;  %vm384_vm2 = vcmask 48128  }
  0x19   : > { %s347_s25 = scalar_select %p346_p13, %s848_s30, 1  ;;  %767 = vset.pattern.permute.xlu2 %v871_v9  ;;  %v527_v10 = vld [vmem:[%s1082_s6] sm:$0xf]  ;;  %768 = vset.pattern.permute.xlu1 %v871_v9  ;;  %vm370_vm3 = vcmask 64512   ;;  %vm413_vm4 = vcmask 1043456   ;;  %vm429_vm5 = vcmask 1045504   ;;  %v463_v30 = vlaneseq }
  0x1a   : > { %s675_s26 = sshll.u32 %s345_s24, 1  ;;  %s868_s24 = smov 6   ;;  %769 = vset.pattern.permute.xlu0 %v871_v9  ;;  %v418_v29 = vld [vmem:[%s1078_s2] sm:$0xf]  ;;  %vm425_vm6 = vcmask 97280   ;;  %vm493_vm9 = vcmask 1014784  }
  0x1b   : > { %s349_s13 = sadd.s32 %s675_s26, %s347_s25  ;;  %v464_v31 = vand.u32 127, %v463_v30  ;;  %s682_s21 = sadd.s32 4294967292, %s679_s20  ;;  %v528_v52 = vld [vmem:[%s1083_s7] sm:$0xff]  ;;  %vm487_vm10 = vcmask 1031168   ;;  %vm506_vm11 = vcmask 195584  }
  0x1c   : > { %s676_s14 = sshll.u32 %s349_s13, 1  ;;  %v466_v33 = vstv %s682_s21  ;;  %v500_v55 = vld [vmem:[%s1081_s5] sm:$0xff]  ;;  %s341_s26 = sand.u32 1, %s840_s28  }
  0x1d   : > { %s351_s17 = scalar_lea.vmem %s1076_s0, %s676_s14  ;;  %s359_s22 = scalar_lea.vmem %s1077_s1, %s676_s14  ;;  %v465_v32 = vadd.s32 128, %v464_v31  ;;  %v467_v36 = vadd.s32 %v466_v33, %v464_v31 }
  0x1e   : > { %v362_v0 = vld [vmem:[%s351_s17] sm:$0x3]  ;;  %s674_s14 = sshll.u32 %s341_s26, 3 }
  0x1f   : > { %365 = vst [vmem:[#allocation1] ss:$4 sm:$0xff] %v362_v0  ;;  %v363_v1 = vld [vmem:[%s359_s22] sm:$0x3]  ;;  %v537_v8 = vsel %vm408_vm0, %v362_v0, 0  ;;  %v468_v34 = vadd.s32 %v466_v33, %v465_v32  ;;  %vm469_vm8 = vcmp.ge.s32.totalorder %v467_v36, 0 }
  0x20   : > { %546 = vmatpush.bf16.msra.mxu3 %v537_v8 }
  0x21   : > { %vm470_vm7 = vcmp.ge.s32.totalorder %v468_v34, 0 }
  0x23   : > { %684 = vmatmul.msk.bf16.vlgmr.msra.gmra.mxu3 %vm398_vm1, %v527_v10 }
  0x26   : > { %v366_v2 = vld.sshfl [vmem:[#allocation1] sm:$0xff pattern:$0x73625140] }
  0x27   : > { %374 = vst [vmem:[#allocation1] ss:$4 sm:$0xff] %v363_v1  ;;  %368 = vrot.lane.b32.xlu2 %v366_v2, %s866_s11  ;;  %s686_s11 = sshll.u32 %s852_s9, 1 }
  0x28   : > { %s566_s13 = sadd.s32 %s848_s30, %s686_s11  ;;  %s556_s30 = scalar_lea.sflag [#allocation3], %s341_s26 }
  0x29   : > { %s687_s17 = sshll.u32 %s566_s13, 3  ;;  %s790_s13 = scalar_lea.hbm %s1084_s8, 32 }
  0x2a   : > { %s568_s22 = scalar_lea.hbm %s1084_s8, %s687_s17 }
  0x2b   : > { %s572_s25 = sshll.u32 %s568_s22, 4  ;;  %s573_s25 = int_to_ptr.hbm [resolvable:$true] %s572_s25 }
  0x2c   : > { %s784_s9 = sshra.s32 %s573_s25, 4  ;;  %s785_s9 = int_to_ptr.hbm [resolvable:$true] %s784_s9 }
  0x2d   : > { %p791_p4 = scmp.lt.s32.totalorder %s785_s9, %s1084_s8 }
  0x2e   : > { %v375_v3 = vld.sshfl [vmem:[#allocation1] sm:$0xff pattern:$0x73625140] }
  0x2f   : > { %377 = vrot.lane.b32.xlu0 %v375_v3, %s867_s10  ;;  %379 = vst [vmem:[#allocation1] ss:$4 sm:$0xff] %v362_v0  ;;  %422 = vperm.xlu2 %767, %v419_v7  }
  0x36   : > { %v380_v4 = vld.sshfl [vmem:[#allocation1] sm:$0xff pattern:$0x73625140] }
  0x37   : > { %382 = vrot.lane.b32.xlu0 %v380_v4, %s868_s24  ;;  %388 = vst [vmem:[#allocation1] ss:$4 sm:$0xff] %v363_v1  ;;  %s343_s24 = scalar_lea.vmem [#allocation2], %s674_s14 }
  0x3e   : > { %v389_v5 = vld.sshfl [vmem:[#allocation1] sm:$0xff pattern:$0x73625140] }
  0x3f   : > { %391 = vrot.lane.b32.xlu1 %v389_v5, %s869_s15  ;;  %393 = vst [vmem:[#allocation1] ss:$4 sm:$0xff] %v362_v0  ;;  %v499_v0 = vld [vmem:[%s1080_s4] sm:$0xf] }
  0x46   : > { %v394_v6 = vld.sshfl [vmem:[#allocation1] sm:$0xff pattern:$0x73625140] }
  0x47   : > { %396 = vrot.lane.b32.xlu1 %v394_v6, %s870_s16  ;;  %s570_s16 = sshll.u32 %s343_s24, 4  ;;  %s571_s16 = int_to_ptr.vmem [resolvable:$true] %s570_s16 }
  0x81   : > { %v369_v16 = vpop.permute.xlu2 %368 }
  0x82   : > { %v373_v18 = vsel %vm370_vm3, %v363_v1, %v369_v16 }
  0x89   : > { %v423_v35 = vpop.permute.xlu2 %422 }
  0xa1   : > { %v378_v11 = vpop.permute.xlu0 %377 }
  0xa6   : > { %v548_v53 = vpop.f32.mrf.mxu3 }
  0xa9   : > { %v383_v13 = vpop.permute.xlu0 %382 }
  0xaa   : > { %v387_v14 = vsel %vm384_vm2, %v378_v11, %v383_v13  ;;  %v404_v15 = vrot.slane %v383_v13, 6 }
  0xab   : > { %v403_v17 = vrot.slane %v387_v14, 6 }
  0xac   : > { %v412_v19 = vsel %vm408_vm0, %v369_v16, %v404_v15 }
  0xad   : > { %v410_v25 = vsel %vm408_vm0, %v373_v18, %v403_v17 }
  0xae   : > { %v550_v54 = vpop.f32.mrf.mxu3 }
  0xb1   : > { %v392_v12 = vpop.permute.xlu1 %391 }
  0xb9   : > { %v397_v20 = vpop.permute.xlu1 %396 }
  0xba   : > { %v401_v21 = vsel %vm398_vm1, %v392_v12, %v397_v20  ;;  %v407_v22 = vrot.slane %v397_v20, 4 }
  0xbb   : > { %v406_v23 = vrot.slane %v401_v21, 4 }
  0xbc   : > { %v417_v24 = vsel %vm413_vm4, %v412_v19, %v407_v22 }
  0xbd   : > { %v432_v26 = vsel %vm429_vm5, %v417_v24, 0  ;;  %v415_v27 = vsel %vm413_vm4, %v410_v25, %v406_v23 }
  0xbe   : > { %454 = vmatpush.bf16.msra.mxu1 %v432_v26  ;;  %v430_v28 = vsel %vm429_vm5, %v415_v27, 0 }
  0xbf   : > { %441 = vmatpush.bf16.msra.mxu0 %v430_v28 }
  0xc1   : > { %681 = vmatmul.msk.bf16.vlgmr.msra.gmra.mxu1 %vm425_vm6, %v418_v29 }
  0xc2   : > { %680 = vmatmul.msk.bf16.vlgmr.msra.gmra.mxu0 %vm425_vm6, %v418_v29 }
 0x13e   : > { %v456_v37 = vpop.f32.mrf.mxu1 }
 0x13f   : > { %v457_v38 = vadd.f32 %v456_v37, %v423_v35  ;;  %v443_v39 = vpop.f32.mrf.mxu0 }
 0x140   : > { %v444_v40 = vadd.f32 %v443_v39, %v423_v35 }
 0x141   : > { %v461_v41 = vmax.f32 %v457_v38, 0.0 }
 0x142   : > { %v460_v42 = vmax.f32 %v444_v40, 0.0 }
 0x143   : > { %v476_v43 = vsel %vm470_vm7, %v461_v41, 0.0 }
 0x144   : > { %v475_v44 = vsel %vm469_vm8, %v460_v42, 0.0 }
 0x145   : > { %v477_v45 = vpack.c.bf16 %v476_v43, %v475_v44 }
 0x146   : > { %v458_v46 = vpop.f32.mrf.mxu1 }
 0x147   : > { %v445_v47 = vpop.f32.mrf.mxu0  ;;  %v480_v48 = vunpack.c.h.b16 %v477_v45  ;;  %v479_v49 = vunpack.c.l.b16 %v477_v45 }
 0x149   : > { %v482_v50 = vpack.c.b16 %v480_v48, %v480_v48  ;;  %v481_v51 = vpack.c.b16 %v479_v49, %v479_v49 }
 0x14b   : > { %491 = vrot.lane.b32.xlu1 %v482_v50, %s869_s15  ;;  %483 = vrot.lane.b32.xlu2 %v481_v51, %s867_s10 }
 0x14c   : > { %489 = vrot.lane.b32.xlu0 %v481_v51, %s869_s15 }
 0x153   : > { %531 = vperm.xlu2 %767, %v528_v52   ;;  %503 = vperm.xlu1 %768, %v500_v55  }
 0x154   : > { %485 = vrot.lane.b32.xlu0 %v482_v50, %s867_s10  ;;  %s786_s10 = scalar_lea.hbm %s785_s9, 8 }
 0x155   : > { %p787_p0 = scmp.ne.s32.totalorder %s785_s9, %s786_s10  ;;  %p792_p5 = scmp.lt.s32.totalorder %s790_s13, %s786_s10 }
 0x157   : > { %p788_p1 = pnand %p787_p0, %p968_p3  ;;  %p793_p6 = por %p792_p5, %p791_p4 }
 0x159   : > { %p789_p2 = pneg %p788_p1 }
 0x15b   : > { %p794_p7 = pnand %p793_p6, %p789_p2 }
 0x1a5   : > { %v484_v60 = vpop.permute.xlu2 %483 }
 0x1ad   : > { %v532_v2 = vpop.permute.xlu2 %531 }
 0x1ae   : > { %v549_v5 = vadd.f32 %v548_v53, %v532_v2 }
 0x1bd   : > { %v492_v56 = vpop.permute.xlu1 %491 }
 0x1be   : > { %v490_v57 = vpop.permute.xlu0 %489 }
 0x1bf   : > { %v494_v58 = vsel %vm493_vm9, %v490_v57, %v492_v56 }
 0x1c0   : > { %v511_v59 = vsel %vm413_vm4, %v494_v58, 0 }
 0x1c1   : > { %519 = vmatpush.bf16.msra.mxu2 %v511_v59 }
 0x1c5   : > { %v504_v1 = vpop.permute.xlu1 %503 }
 0x1c6   : > { %v486_v61 = vpop.permute.xlu0 %485 }
 0x1c7   : > { %v488_v62 = vsel %vm487_vm10, %v484_v60, %v486_v61 }
 0x1c8   : > { %v497_v63 = vsel %vm413_vm4, %v477_v45, %v488_v62 }
 0x1c9   : > { %520 = vmatpush.bf16.msra.mxu2 %v497_v63 }
 0x1cc   : > { %683 = vmatmul.msk.bf16.vlgmr.msra.gmra.mxu2 %vm506_vm11, %v499_v0 }
 0x24f   : > { %v522_v3 = vpop.f32.mrf.mxu2 }
 0x250   : > { %v523_v4 = vadd.f32 %v522_v3, %v504_v1 }
 0x252   : > { %v526_v6 = vmax.f32 %v523_v4, 0.0 }
 0x254   : > { %v552_v7 = vadd.f32 %v549_v5, %v526_v6 }
 0x256   : > { %v553_v8 = vmax.f32 %v552_v7, 0.0 }
 0x257   : > { %v524_v9 = vpop.f32.mrf.mxu2 }
 0x258   : > { %554 = vst [vmem:[%s343_s24] sm:$0xff] %v553_v8 }
 0x259   : > { %797 = shalt.err (!%p794_p7)
}
 0x25a   : > { %690 = dma.vmem_to_hbm [thread:$0]  (%p968_p3), %s571_s16, 128, %s573_s25, %s556_s30  }
 0x25b PF: > { %p696_p9 = scmp.ge.s32.totalorder %s864_s12, 2  ;;  %s584_s26 = sand.u32 1, %s836_s27  }
 0x25c   : > { %s585_s20 = scalar_lea.sflag [#allocation3], %s584_s26 }
 0x25d   : > { %p693_p10 = pnand %p696_p9, %p977_p8 }
 0x25f   : > { %p694_p11 = pneg %p693_p10 }
 0x261   : > { %831 = dma.done.wait (%p694_p11), %s585_s20, 128  }
 0x262   : > { %833 = vsyncadd (%p694_p11), %s585_s20, 4294967168  ;;  %s21_s12 = sadd.s32 1, %s864_s12   ;;  %s1095_s30 = sld [smem:[#allocation5_spill]] }
 0x263   : > { %p18_p12 = scmp.ge.s32.totalorder %s21_s12, 6   ;;  %s1096_s9 = sld [smem:[#allocation6_spill]] }
 0x264   : > { %s1097_s10 = sld [smem:[#allocation7_spill]]  ;;  %s1099_s27 = smov %s840_s28 }
 0x265   : > { %s1098_s11 = sld [smem:[#allocation8_spill]]  ;;  %s1100_s28 = smov %s844_s29 }
 0x266   : > { %s1101_s29 = smov %s986_s23  ;;  %20 = sbr.rel (!%p18_p12) target bundleno = 5 (0x5), region = 90 }
 0x26b   :  { %591 = vsyncpa [#allocation3], 1 }
 0x26c   :  { %593 = vsyncpa [#allocation3 + $0x1], 1 }

</bundles_post_ra>
